<compile_context>
chip_gen: v7x
topology: tpu7x:2x2x1
jax: 0.10.0
libtpu: 0.0.40
codegen_flags: <defaults>
</compile_context>

<pallas_src>
from functools import partial

import jax
import jax.numpy as jnp
from jax import lax
from jax.experimental import pallas as pl
from jax.experimental.pallas import tpu as pltpu

# problem sizes (small, consistent with the module; Cout == Cin so the residual add is valid)
N, C, H, W = 2, 4, 16, 16

_BLUR_TAPS = [[1.0, 2.0, 1.0],
              [2.0, 4.0, 2.0],
              [1.0, 2.0, 1.0]]  # /16, identical for every channel (fixed depthwise blur)


def _residual_blurconv_kernel(xp_ref, xres_ref, bw_ref, b_ref, o_ref, *, n, h, w, c):
    # xp_ref:   (N, H+2, (W+2)*C)   input, zero-padded by 1 in H and W, lanes = (w, c)
    # xres_ref: (N*H, W*C)          original input in output layout (residual skip)
    # bw_ref:   (3, (W+2)*C, W*C)   Toeplitz-expanded 3x3 conv weights, one slab per kh tap
    # b_ref:    (1, W*C)            bias, tiled per output w position
    # o_ref:    (N*H, W*C)          lane-dense output
    pwc = (w + 2) * c
    xp = xp_ref[...]                                              # (N, H+2, (W+2)*C)

    # ---- fixed 3x3 blur, separable [1,2,1]/4 x [1,2,1]/4, on the zero-padded input -------
    rb = (xp[:, :, 0:w * c]
          + 2.0 * xp[:, :, c:(w + 1) * c]
          + xp[:, :, 2 * c:(w + 2) * c])                          # W pass  (N, H+2, W*C)
    blurred = (rb[:, 0:h, :]
               + 2.0 * rb[:, 1:h + 1, :]
               + rb[:, 2:h + 2, :]) * (1.0 / 16.0)                # H pass  (N, H, W*C)

    # ---- re-zero-pad the blurred intermediate by 1 (exactly what Conv2d(padding=1) sees) --
    zlane = jnp.zeros((n, h, c), jnp.float32)
    bp = jnp.concatenate([zlane, blurred, zlane], axis=-1)        # (N, H, (W+2)*C)
    zrow = jnp.zeros((n, 1, pwc), jnp.float32)
    taps = (jnp.concatenate([zrow, bp[:, 0:h - 1, :]], axis=1),   # kh = 0  (rows shifted down)
            bp,                                                   # kh = 1
            jnp.concatenate([bp[:, 1:h, :], zrow], axis=1))       # kh = 2  (rows shifted up)

    # ---- 3x3 conv as 3 accumulating lane-dense MXU matmuls (one per kh tap) ---------------
    acc = jnp.zeros((n * h, w * c), jnp.float32)
    for kh in range(3):
        acc += jnp.dot(taps[kh].reshape(n * h, pwc), bw_ref[kh],
                       preferred_element_type=jnp.float32)        # (N*H, W*C)

    # ---- bias + residual skip (DropPath(0.0) == identity); single lane-dense store --------
    o_ref[...] = (acc + b_ref[...] + xres_ref[...]).astype(o_ref.dtype)


def prepare_params(conv_w_oihw, conv_b, w_size):
    """One-time weight preprocessing (hoisted out of the per-call path)."""
    cout, cin, _, _ = conv_w_oihw.shape
    # big_w[kh, (w_in, cin), (w_out, cout)] = conv_w[cout, cin, kh, w_in - w_out], 0<=diff<=2
    kw = jnp.arange(3)[:, None, None]
    win = jnp.arange(w_size + 2)[None, :, None]
    wout = jnp.arange(w_size)[None, None, :]
    shift = (win == wout + kw).astype(jnp.float32)                     # (3, W+2, W)
    big_w = jnp.einsum('kiw,ochk->hicwo', shift,
                       conv_w_oihw.astype(jnp.float32))                # (3, W+2, Cin, W, Cout)
    big_w = big_w.reshape(3, (w_size + 2) * cin, w_size * cout)        # (3, 72, 64)
    bias_row = jnp.tile(conv_b.astype(jnp.float32), w_size).reshape(1, w_size * cout)
    return big_w, bias_row


@jax.jit
def residual_blurconv(x_nchw, big_w, bias_row):
    """Residual forward: conv3x3(blur3x3(x)) + bias + x.  x_nchw: (N, C, H, W) f32."""
    n, c, h, w = x_nchw.shape

    # layout plumbing (fused under this jit): NCHW -> NHWC -> pad 1 -> flatten (w, c) lanes
    x_nhwc = jnp.transpose(x_nchw, (0, 2, 3, 1))
    xp = jnp.pad(x_nhwc, ((0, 0), (1, 1), (1, 1), (0, 0))).reshape(n, h + 2, (w + 2) * c)
    xres = x_nhwc.reshape(n * h, w * c)                                # residual, output layout

    out_flat = pl.pallas_call(
        partial(_residual_blurconv_kernel, n=n, h=h, w=w, c=c),
        out_shape=jax.ShapeDtypeStruct((n * h, w * c), jnp.float32),
        in_specs=[
            pl.BlockSpec(memory_space=pltpu.MemorySpace.VMEM),   # xp
            pl.BlockSpec(memory_space=pltpu.MemorySpace.VMEM),   # xres
            pl.BlockSpec(memory_space=pltpu.MemorySpace.VMEM),   # big_w
            pl.BlockSpec(memory_space=pltpu.MemorySpace.VMEM),   # bias_row
        ],
        out_specs=pl.BlockSpec(memory_space=pltpu.MemorySpace.VMEM),
    )(xp, xres, big_w, bias_row)

    # (N*H, W*C) -> NCHW to match the PyTorch output convention
    return jnp.transpose(out_flat.reshape(n, h, w, c), (0, 3, 1, 2))


def reference_forward(x_nchw, conv_w_oihw, conv_b):
    """Pure-JAX reference matching the PyTorch module: x + conv(blur(x)) (DropPath rate 0)."""
    cin = x_nchw.shape[1]
    blur = jnp.array(_BLUR_TAPS, jnp.float32) / 16.0
    blur_filt = jnp.broadcast_to(blur, (cin, 1, 3, 3))   # depthwise, groups=Cin
    blurred = lax.conv_general_dilated(
        x_nchw, blur_filt, window_strides=(1, 1), padding=((1, 1), (1, 1)),
        dimension_numbers=("NCHW", "OIHW", "NCHW"), feature_group_count=cin)
    y = lax.conv_general_dilated(
        blurred, conv_w_oihw, window_strides=(1, 1), padding=((1, 1), (1, 1)),
        dimension_numbers=("NCHW", "OIHW", "NCHW"))
    return y + conv_b.reshape(1, -1, 1, 1) + x_nchw


if __name__ == "__main__":
    key = jax.random.PRNGKey(0)
    kx, kw_, kb = jax.random.split(key, 3)

    x = jax.random.normal(kx, (N, C, H, W), jnp.float32)
    conv_w = jax.random.normal(kw_, (C, C, 3, 3), jnp.float32) * 0.1
    conv_b = jax.random.normal(kb, (C,), jnp.float32) * 0.1

    # one-time weight preprocessing (hoisted out of the forward path)
    big_w, bias_row = prepare_params(conv_w, conv_b, W)

    out = jax.block_until_ready(residual_blurconv(x, big_w, bias_row))

    ref = reference_forward(x, conv_w, conv_b)
    assert out.shape == (N, C, H, W)
    assert jnp.allclose(out, ref, rtol=1e-4, atol=1e-4), "mismatch vs reference"

    print("KERNEL_OK")
</pallas_src>

<mosaic_0001>
module attributes {stable_mosaic.version = 11 : i64} {
  func.func @_residual_blurconv_kernel(%arg0: memref<2x18x72xf32, #tpu.memory_space<vmem>>, %arg1: memref<32x64xf32, #tpu.memory_space<vmem>>, %arg2: memref<3x72x64xf32, #tpu.memory_space<vmem>>, %arg3: memref<1x64xf32, #tpu.memory_space<vmem>>, %arg4: memref<32x64xf32, #tpu.memory_space<vmem>>) attributes {dimension_semantics = [], scalar_prefetch = 0 : i64, scratch_operands = 0 : i64, tpu.core_type = #tpu.core_type<tc>} {
    %c0 = arith.constant 0 : index
    %c0_0 = arith.constant 0 : index
    %c0_1 = arith.constant 0 : index
    %0 = vector.load %arg0[%c0, %c0_0, %c0_1] : memref<2x18x72xf32, #tpu.memory_space<vmem>>, vector<2x18x72xf32>
    %1 = vector.extract_strided_slice %0 {offsets = [0, 0, 0], sizes = [2, 18, 64], strides = [1, 1, 1]} : vector<2x18x72xf32> to vector<2x18x64xf32>
    %2 = vector.extract_strided_slice %0 {offsets = [0, 0, 4], sizes = [2, 18, 64], strides = [1, 1, 1]} : vector<2x18x72xf32> to vector<2x18x64xf32>
    %cst = arith.constant 2.000000e+00 : f32
    %3 = vector.broadcast %cst : f32 to vector<2x18x64xf32>
    %4 = arith.mulf %3, %2 : vector<2x18x64xf32>
    %5 = arith.addf %1, %4 : vector<2x18x64xf32>
    %6 = vector.extract_strided_slice %0 {offsets = [0, 0, 8], sizes = [2, 18, 64], strides = [1, 1, 1]} : vector<2x18x72xf32> to vector<2x18x64xf32>
    %7 = arith.addf %5, %6 : vector<2x18x64xf32>
    %8 = vector.extract_strided_slice %7 {offsets = [0, 0, 0], sizes = [2, 16, 64], strides = [1, 1, 1]} : vector<2x18x64xf32> to vector<2x16x64xf32>
    %9 = vector.extract_strided_slice %7 {offsets = [0, 1, 0], sizes = [2, 16, 64], strides = [1, 1, 1]} : vector<2x18x64xf32> to vector<2x16x64xf32>
    %cst_2 = arith.constant 2.000000e+00 : f32
    %10 = vector.broadcast %cst_2 : f32 to vector<2x16x64xf32>
    %11 = arith.mulf %10, %9 : vector<2x16x64xf32>
    %12 = arith.addf %8, %11 : vector<2x16x64xf32>
    %13 = vector.extract_strided_slice %7 {offsets = [0, 2, 0], sizes = [2, 16, 64], strides = [1, 1, 1]} : vector<2x18x64xf32> to vector<2x16x64xf32>
    %14 = arith.addf %12, %13 : vector<2x16x64xf32>
    %cst_3 = arith.constant 6.250000e-02 : f32
    %15 = vector.broadcast %cst_3 : f32 to vector<2x16x64xf32>
    %16 = arith.mulf %14, %15 : vector<2x16x64xf32>
    %cst_4 = arith.constant 0.000000e+00 : f32
    %17 = vector.broadcast %cst_4 : f32 to vector<2x16x4xf32>
    %18 = tpu.concatenate %17, %16, %17 in 2 : vector<2x16x4xf32>, vector<2x16x64xf32>, vector<2x16x4xf32> -> vector<2x16x72xf32>
    %cst_5 = arith.constant 0.000000e+00 : f32
    %19 = vector.broadcast %cst_5 : f32 to vector<2x1x72xf32>
    %20 = vector.extract_strided_slice %18 {offsets = [0, 0, 0], sizes = [2, 15, 72], strides = [1, 1, 1]} : vector<2x16x72xf32> to vector<2x15x72xf32>
    %21 = tpu.concatenate %19, %20 in 1 : vector<2x1x72xf32>, vector<2x15x72xf32> -> vector<2x16x72xf32>
    %22 = vector.extract_strided_slice %18 {offsets = [0, 1, 0], sizes = [2, 15, 72], strides = [1, 1, 1]} : vector<2x16x72xf32> to vector<2x15x72xf32>
    %23 = tpu.concatenate %22, %19 in 1 : vector<2x15x72xf32>, vector<2x1x72xf32> -> vector<2x16x72xf32>
    %cst_6 = arith.constant 0.000000e+00 : f32
    %24 = vector.broadcast %cst_6 : f32 to vector<32x64xf32>
    %25 = vector.shape_cast %21 : vector<2x16x72xf32> to vector<32x72xf32>
    %c0_7 = arith.constant 0 : index
    %c0_8 = arith.constant 0 : index
    %c0_9 = arith.constant 0 : index
    %26 = vector.load %arg2[%c0_7, %c0_8, %c0_9] : memref<3x72x64xf32, #tpu.memory_space<vmem>>, vector<1x72x64xf32>
    %27 = vector.shape_cast %26 : vector<1x72x64xf32> to vector<72x64xf32>
    %cst_10 = arith.constant dense<0.000000e+00> : vector<32x64xf32>
    %28 = tpu.matmul %25, %27, %cst_10 {dimension_numbers = #tpu.dot_dimension_numbers<[1], [0], [0], [1], [0, 0, 1, 1], [], []>} : vector<32x72xf32>, vector<72x64xf32>, vector<32x64xf32> -> vector<32x64xf32>
    %29 = arith.addf %24, %28 : vector<32x64xf32>
    %30 = vector.shape_cast %18 : vector<2x16x72xf32> to vector<32x72xf32>
    %c1 = arith.constant 1 : index
    %c0_11 = arith.constant 0 : index
    %c0_12 = arith.constant 0 : index
    %31 = vector.load %arg2[%c1, %c0_11, %c0_12] : memref<3x72x64xf32, #tpu.memory_space<vmem>>, vector<1x72x64xf32>
    %32 = vector.shape_cast %31 : vector<1x72x64xf32> to vector<72x64xf32>
    %cst_13 = arith.constant dense<0.000000e+00> : vector<32x64xf32>
    %33 = tpu.matmul %30, %32, %cst_13 {dimension_numbers = #tpu.dot_dimension_numbers<[1], [0], [0], [1], [0, 0, 1, 1], [], []>} : vector<32x72xf32>, vector<72x64xf32>, vector<32x64xf32> -> vector<32x64xf32>
    %34 = arith.addf %29, %33 : vector<32x64xf32>
    %35 = vector.shape_cast %23 : vector<2x16x72xf32> to vector<32x72xf32>
    %c2 = arith.constant 2 : index
    %c0_14 = arith.constant 0 : index
    %c0_15 = arith.constant 0 : index
    %36 = vector.load %arg2[%c2, %c0_14, %c0_15] : memref<3x72x64xf32, #tpu.memory_space<vmem>>, vector<1x72x64xf32>
    %37 = vector.shape_cast %36 : vector<1x72x64xf32> to vector<72x64xf32>
    %cst_16 = arith.constant dense<0.000000e+00> : vector<32x64xf32>
    %38 = tpu.matmul %35, %37, %cst_16 {dimension_numbers = #tpu.dot_dimension_numbers<[1], [0], [0], [1], [0, 0, 1, 1], [], []>} : vector<32x72xf32>, vector<72x64xf32>, vector<32x64xf32> -> vector<32x64xf32>
    %39 = arith.addf %34, %38 : vector<32x64xf32>
    %c0_17 = arith.constant 0 : index
    %c0_18 = arith.constant 0 : index
    %40 = vector.load %arg3[%c0_17, %c0_18] : memref<1x64xf32, #tpu.memory_space<vmem>>, vector<1x64xf32>
    %41 = vector.broadcast %40 : vector<1x64xf32> to vector<32x64xf32>
    %42 = arith.addf %39, %41 : vector<32x64xf32>
    %c0_19 = arith.constant 0 : index
    %c0_20 = arith.constant 0 : index
    %43 = vector.load %arg1[%c0_19, %c0_20] : memref<32x64xf32, #tpu.memory_space<vmem>>, vector<32x64xf32>
    %44 = arith.addf %42, %43 : vector<32x64xf32>
    %c0_21 = arith.constant 0 : index
    %c0_22 = arith.constant 0 : index
    %45 = vector.load %arg4[%c0_21, %c0_22] : memref<32x64xf32, #tpu.memory_space<vmem>>, vector<32x64xf32>
    tpu.vector_store %arg4[%c0_21, %c0_22], %44 {strides = array<i32>} : memref<32x64xf32, #tpu.memory_space<vmem>>, vector<32x64xf32>,
    return
  }
}

</mosaic_0001>

<bundles_post_ra>
// kernel: residual_blurconv.1
= control target key start
LH: loop header
LB: loop body
LE: loop exit
PB: predicated region body
PF: predicated region fallthrough
CT: control target
= control target key end

     0   :  { %s756_s21 = smov 120   ;;  %s757_s22 = smov 124   ;;  %vm101_vm0 = vcmask 1046528   ;;  %vm126_vm1 = vcmask 1045504   ;;  %vm165_vm2 = vcmask 31744   ;;  %vm170_vm3 = vcmask 556032   ;;  %s986_s0 = inlined_call_operand.vmem [shape: f32[2,18,72], index: 0, kind: input, shape index: {}]   ;;  %s987_s2 = inlined_call_operand.vmem [shape: f32[3,72,64], index: 2, kind: input, shape index: {}]   ;;  %s988_s3 = inlined_call_operand.vmem [shape: f32[1,64], index: 3, kind: input, shape index: {}]   ;;  %s989_s1 = inlined_call_operand.vmem [shape: f32[32,64], index: 1, kind: input, shape index: {}]   ;;  %s990_s4 = inlined_call_operand.vmem [shape: f32[32,64], index: 4, kind: output, shape index: {}]  }
   0x1   :  { %v787_v0 = vld [vmem:[%s986_s0] sm:$0xff]  ;;  %v792_v1 = vld [vmem:[%s986_s0 + $0x10] sm:$0x3]  ;;  %v797_v2 = vld [vmem:[%s986_s0 + $0x8] sm:$0xff]  ;;  %s758_s15 = smov 4   ;;  %vm219_vm4 = vcmask 588800  }
   0x2   :  { %65 = vrot.lane.b32.xlu1 %v787_v0, %s756_s21  ;;  %v23_v3 = vmul.f32 2.0, %v787_v0  ;;  %v25_v4 = vmul.f32 2.0, %v792_v1  ;;  %v24_v5 = vmul.f32 2.0, %v797_v2  ;;  %v806_v6 = vld [vmem:[%s986_s0 + $0x20] sm:$0xff]  ;;  %v811_v7 = vld [vmem:[%s986_s0 + $0x18] sm:$0xff]  ;;  %v545_v12 = vld [vmem:[%s987_s2 + $0x48] sm:$0xff] }
   0x3   :  { %v27_v8 = vmul.f32 2.0, %v806_v6  ;;  %v26_v9 = vmul.f32 2.0, %v811_v7  ;;  %v820_v10 = vld [vmem:[%s986_s0 + $0x28] sm:$0x3]  ;;  %v546_v13 = vld [vmem:[%s987_s2 + $0x50] sm:$0xff]  ;;  %v200_v14 = vld [vmem:[%s987_s2] sm:$0xff] }
   0x4   :  { %35 = vrot.lane.b32.xlu0 %v23_v3, %s757_s22  ;;  %v28_v11 = vmul.f32 2.0, %v820_v10  ;;  %v687_v15 = vpack.c.bf16 %v546_v13, %v545_v12  ;;  %v201_v16 = vld [vmem:[%s987_s2 + $0x8] sm:$0xff]  ;;  %v547_v17 = vld [vmem:[%s987_s2 + $0x58] sm:$0xff]  ;;  %v548_v18 = vld [vmem:[%s987_s2 + $0x60] sm:$0xff]  ;;  %vm179_vm5 = vcmask 1040384   ;;  %vm536_vm6 = vcmask 523264  }
   0x5   :  { %v703_v19 = vpack.c.bf16 %v201_v16, %v200_v14  ;;  %v691_v20 = vpack.c.bf16 %v548_v18, %v547_v17  ;;  %v202_v21 = vld [vmem:[%s987_s2 + $0x10] sm:$0xff]  ;;  %v203_v22 = vld [vmem:[%s987_s2 + $0x18] sm:$0xff]  ;;  %v549_v23 = vld [vmem:[%s987_s2 + $0x68] sm:$0xff] }
   0x6   :  { %39 = vrot.lane.b32.xlu1 %v25_v4, %s757_s22  ;;  %688 = vmatprep.subr.bf16.mxu1 %v687_v15  ;;  %v707_v24 = vpack.c.bf16 %v203_v22, %v202_v21  ;;  %v550_v25 = vld [vmem:[%s987_s2 + $0x70] sm:$0xff]  ;;  %v204_v26 = vld [vmem:[%s987_s2 + $0x20] sm:$0xff]  ;;  %v205_v27 = vld [vmem:[%s987_s2 + $0x28] sm:$0xff] }
   0x7   :  { %690 = vmatpush3.bf16.msra.mxu1 %v687_v15  ;;  %704 = vmatprep.subr.bf16.mxu0 %v703_v19  ;;  %v695_v28 = vpack.c.bf16 %v550_v25, %v549_v23  ;;  %v711_v29 = vpack.c.bf16 %v205_v27, %v204_v26  ;;  %v551_v30 = vld [vmem:[%s987_s2 + $0x78] sm:$0xff]  ;;  %v552_v31 = vld [vmem:[%s987_s2 + $0x80] sm:$0xff]  ;;  %v206_v32 = vld [vmem:[%s987_s2 + $0x30] sm:$0xff] }
   0x8   :  { %37 = vrot.lane.b32.xlu0 %v24_v5, %s757_s22  ;;  %692 = vmatprep.subr.bf16.mxu1 %v691_v20  ;;  %v207_v33 = vld [vmem:[%s987_s2 + $0x38] sm:$0xff]  ;;  %v699_v34 = vpack.c.bf16 %v552_v31, %v551_v30  ;;  %v553_v48 = vld [vmem:[%s987_s2 + $0x88] sm:$0xff]  ;;  %v562_v49 = vld [vmem:[%s987_s2 + $0x90] sm:$0xff] }
   0x9   :  { %706 = vmatpush3.bf16.msra.mxu0 %v703_v19  ;;  %v715_v35 = vpack.c.bf16 %v207_v33, %v206_v32  ;;  %v563_v50 = vld [vmem:[%s987_s2 + $0x98] sm:$0xff]  ;;  %v208_v57 = vld [vmem:[%s987_s2 + $0x40] sm:$0xff] }
   0xa   :  { %69 = vrot.lane.b32.xlu1 %v792_v1, %s756_s21  ;;  %708 = vmatprep.subr.bf16.mxu0 %v707_v24  ;;  %v886_v53 = vpack.c.bf16 %v563_v50, %v562_v49  ;;  %v566_v50 = vld [vmem:[%s987_s2 + $0xb0] sm:$0xff] }
   0xb   :  { %694 = vmatpush3.bf16.msra.mxu1 %v691_v20 }
   0xc   :  { %67 = vrot.lane.b32.xlu0 %v797_v2, %s756_s21  ;;  %696 = vmatprep.subr.bf16.mxu1 %v695_v28 }
   0xd   :  { %710 = vmatpush3.bf16.msra.mxu0 %v707_v24 }
   0xe   :  { %43 = vrot.lane.b32.xlu1 %v27_v8, %s757_s22  ;;  %712 = vmatprep.subr.bf16.mxu0 %v711_v29 }
   0xf   :  { %698 = vmatpush3.bf16.msra.mxu1 %v695_v28 }
  0x10   :  { %41 = vrot.lane.b32.xlu0 %v26_v9, %s757_s22  ;;  %700 = vmatprep.subr.bf16.mxu1 %v699_v34 }
  0x11   :  { %714 = vmatpush3.bf16.msra.mxu0 %v711_v29 }
  0x12   :  { %71 = vrot.lane.b32.xlu1 %v811_v7, %s756_s21  ;;  %716 = vmatprep.subr.bf16.mxu0 %v715_v35 }
  0x13   :  { %702 = vmatpush3.bf16.msra.mxu1 %v699_v34 }
  0x14   :  { %45 = vrot.lane.b32.xlu0 %v28_v11, %s757_s22  ;;  %631 = vmatprep.subr.mxu1 %v553_v48 }
  0x15   :  { %718 = vmatpush3.bf16.msra.mxu0 %v715_v35 }
  0x16   :  { %75 = vrot.lane.b32.xlu1 %v820_v10, %s756_s21  ;;  %655 = vmatprep.subr.mxu0 %v208_v57 }
  0x17   :  { %632 = vmatpush3.msra.mxu1 %v553_v48 }
  0x18   :  { %73 = vrot.lane.b32.xlu0 %v806_v6, %s756_s21  ;;  %735 = vmatprep.subr.bf16.mxu1 %v886_v53 }
  0x19   :  { %656 = vmatpush3.msra.mxu0 %v208_v57  ;;  %v569_v57 = vld [vmem:[%s987_s2 + $0xc8] sm:$0xff] }
  0x1a   :  { %720 = vmatprep.subr.bf16.mxu0 %v886_v53 }
  0x74   :  { %v66_v36 = vpop.permute.xlu1 %65 }
  0x76   :  { %v36_v37 = vpop.permute.xlu0 %35 }
  0x77   :  { %v53_v38 = vadd.f32 %v36_v37, %v787_v0 }
  0x78   :  { %v40_v39 = vpop.permute.xlu1 %39 }
  0x79   :  { %v55_v40 = vadd.f32 %v40_v39, %v792_v1  ;;  %v83_v41 = vadd.f32 %v66_v36, %v53_v38  ;;  %v564_v39 = vld [vmem:[%s987_s2 + $0xa0] sm:$0xff] }
  0x7a   :  { %v38_v42 = vpop.permute.xlu0 %37 }
  0x7b   :  { %v54_v44 = vadd.f32 %v38_v42, %v797_v2  ;;  %v89_v46 = vmul.f32 2.0, %v83_v41  ;;  %v127_v1 = vrot.slane %v83_v41, 2 }
  0x7c   :  { %v70_v43 = vpop.permute.xlu1 %69 }
  0x7d   :  { %v85_v45 = vadd.f32 %v70_v43, %v55_v40  ;;  %v102_v58 = vrot.slane %v89_v46, 1  ;;  %v565_v40 = vld [vmem:[%s987_s2 + $0xa8] sm:$0xff] }
  0x7e   :  { %v68_v47 = vpop.permute.xlu0 %67 }
  0x7f   :  { %v91_v51 = vmul.f32 2.0, %v85_v45  ;;  %v84_v52 = vadd.f32 %v68_v47, %v54_v44  ;;  %v130_v60 = vrot.slane %v85_v45, 2  ;;  %v723_v47 = vpack.c.bf16 %v565_v40, %v564_v39 }
  0x80   :  { %v44_v54 = vpop.permute.xlu1 %43 }
  0x81   :  { %v105_v55 = vrot.slane %v91_v51, 1  ;;  %v90_v56 = vmul.f32 2.0, %v84_v52  ;;  %v128_v62 = vrot.slane %v84_v52, 2  ;;  %v57_v16 = vadd.f32 %v44_v54, %v806_v6  ;;  %v567_v51 = vld [vmem:[%s987_s2 + $0xb8] sm:$0xff] }
  0x82   :  { %v42_v59 = vpop.permute.xlu0 %41 }
  0x83   :  { %v103_v61 = vrot.slane %v90_v56, 1  ;;  %v56_v63 = vadd.f32 %v42_v59, %v811_v7  ;;  %v131_v12 = vsel %vm126_vm1, %v128_v62, %v130_v60  ;;  %v129_v7 = vsel %vm126_vm1, %v127_v1, %v128_v62  ;;  %v568_v56 = vld [vmem:[%s987_s2 + $0xc0] sm:$0xff] }
  0x84   :  { %v72_v0 = vpop.permute.xlu1 %71 }
  0x85   :  { %v106_v2 = vsel %vm101_vm0, %v103_v61, %v105_v55  ;;  %v104_v3 = vsel %vm101_vm0, %v102_v58, %v103_v61  ;;  %v86_v9 = vadd.f32 %v72_v0, %v56_v63  ;;  %v727_v55 = vpack.c.bf16 %v567_v51, %v566_v50 }
  0x86   :  { %v117_v4 = vadd.f32 %v106_v2, %v84_v52  ;;  %v46_v5 = vpop.permute.xlu0 %45  ;;  %v116_v8 = vadd.f32 %v104_v3, %v83_v41  ;;  %v731_v58 = vpack.c.bf16 %v569_v57, %v568_v56 }
  0x87   :  { %v58_v11 = vadd.f32 %v46_v5, %v820_v10  ;;  %v92_v21 = vmul.f32 2.0, %v86_v9  ;;  %v132_v29 = vrot.slane %v86_v9, 2 }
  0x88   :  { %v76_v13 = vpop.permute.xlu1 %75  ;;  %v142_v14 = vadd.f32 %v131_v12, %v117_v4  ;;  %v141_v15 = vadd.f32 %v129_v7, %v116_v8  ;;  %v570_v8 = vld [vmem:[%s987_s2 + $0xd0] sm:$0xff] }
  0x89   :  { %v88_v17 = vadd.f32 %v76_v13, %v58_v11  ;;  %v107_v25 = vrot.slane %v92_v21, 1 }
  0x8a   :  { %v74_v18 = vpop.permute.xlu0 %73  ;;  %v146_v19 = vmul.f32 0.0625, %v142_v14  ;;  %v145_v20 = vmul.f32 0.0625, %v141_v15 }
  0x8b   :  { %v94_v22 = vmul.f32 2.0, %v88_v17  ;;  %v87_v23 = vadd.f32 %v74_v18, %v57_v16  ;;  %v135_v26 = vrot.slane %v88_v17, 2 }
  0x8c   :  { %155 = vrot.lane.b32.xlu1 %v146_v19, %s758_s15  ;;  %153 = vrot.lane.b32.xlu0 %v145_v20, %s758_s15 }
  0x8d   :  { %v110_v10 = vrot.slane %v94_v22, 1  ;;  %v93_v24 = vmul.f32 2.0, %v87_v23  ;;  %v133_v28 = vrot.slane %v87_v23, 2 }
  0x8f   :  { %v108_v27 = vrot.slane %v93_v24, 1  ;;  %v136_v33 = vsel %vm126_vm1, %v133_v28, %v135_v26  ;;  %v134_v34 = vsel %vm126_vm1, %v132_v29, %v133_v28  ;;  %v531_v26 = vld [vmem:[%s989_s1 + $0x18] sm:$0xff]  ;;  %v530_v29 = vld [vmem:[%s989_s1 + $0x10] sm:$0xff] }
  0x91   :  { %v111_v30 = vsel %vm101_vm0, %v108_v27, %v110_v10  ;;  %v109_v6 = vsel %vm101_vm0, %v107_v25, %v108_v27  ;;  %v575_v10 = vld [vmem:[%s988_s3] ss:$0 sm:$0xff] }
  0x92   :  { %v119_v31 = vadd.f32 %v111_v30, %v87_v23  ;;  %v118_v32 = vadd.f32 %v109_v6, %v86_v9 }
  0x94   :  { %v144_v35 = vadd.f32 %v136_v33, %v119_v31  ;;  %v143_v36 = vadd.f32 %v134_v34, %v118_v32  ;;  %v529_v34 = vld [vmem:[%s989_s1 + $0x8] sm:$0xff] }
  0x96   :  { %v148_v37 = vmul.f32 0.0625, %v144_v35  ;;  %v147_v38 = vmul.f32 0.0625, %v143_v36 }
  0x98   :  { %159 = vrot.lane.b32.xlu1 %v148_v37, %s758_s15  ;;  %157 = vrot.lane.b32.xlu0 %v147_v38, %s758_s15  ;;  %v528_v38 = vld [vmem:[%s989_s1] sm:$0xff] }
  0xfe   :  { %v156_v41 = vpop.permute.xlu1 %155  ;;  %v154_v42 = vpop.permute.xlu0 %153 }
  0xff   :  { %v167_v43 = vsel %vm165_vm2, 0.0, %v156_v41  ;;  %v166_v44 = vsel %vm165_vm2, 0.0, %v154_v42 }
 0x100   :  { %v172_v45 = vsel %vm170_vm3, %v167_v43, 0.0  ;;  %v171_v46 = vsel %vm170_vm3, %v166_v44, 0.0 }
 0x101   :  { %v181_v48 = vrot.slane %v172_v45, 7  ;;  %633 = vmatprep.mubr.msk.f32.mxu1 %vm219_vm4, %v171_v46  ;;  %v180_v49 = vrot.slane %v171_v46, 7  ;;  %v191_v63 = vrot.slane %v172_v45, 1  ;;  %v190_v0 = vrot.slane %v171_v46, 1 }
 0x102   :  { %634 = vmatmul.mubr.msk.f32.vlgmr.msra.gmra.mrb[0].mxu1 %vm219_vm4, %v172_v45 }
 0x103   :  { %740 = vmatpush3.bf16.msra.mxu1 %v886_v53  ;;  %v188_v52 = vsel %vm179_vm5, 0.0, %v180_v49  ;;  %v182_v54 = vsel %vm179_vm5, %v180_v49, %v181_v48  ;;  %v192_v7 = vsel %vm101_vm0, %v190_v0, %v191_v63  ;;  %v198_v14 = vsel %vm101_vm0, %v191_v63, 0.0 }
 0x104   :  { %657 = vmatprep.mubr.msk.f32.mxu0 %vm219_vm4, %v188_v52  ;;  %736 = vmatprep.subr.bf16.mxu1 %v723_v47 }
 0x105   :  { %658 = vmatmul.mubr.msk.f32.vlgmr.msra.gmra.mrb[0].mxu0 %vm219_vm4, %v182_v54 }
 0x106   :  { %722 = vmatpush3.bf16.msra.mxu0 %v886_v53 }
 0x107   :  { %741 = vmatpush3.bf16.msra.mxu1 %v723_v47  ;;  %724 = vmatprep.subr.bf16.mxu0 %v723_v47 }
 0x108   :  { %737 = vmatprep.subr.bf16.mxu1 %v727_v55 }
 0x10a   :  { %726 = vmatpush3.bf16.msra.mxu0 %v723_v47  ;;  %v160_v59 = vpop.permute.xlu1 %159  ;;  %v158_v60 = vpop.permute.xlu0 %157 }
 0x10b   :  { %v169_v61 = vsel %vm165_vm2, 0.0, %v160_v59  ;;  %742 = vmatpush3.bf16.msra.mxu1 %v727_v55  ;;  %v168_v62 = vsel %vm165_vm2, 0.0, %v158_v60  ;;  %728 = vmatprep.subr.bf16.mxu0 %v727_v55 }
 0x10c   :  { %v174_v1 = vsel %vm170_vm3, %v169_v61, 0.0  ;;  %v173_v2 = vsel %vm170_vm3, %v168_v62, 0.0  ;;  %738 = vmatprep.subr.bf16.mxu1 %v731_v58 }
 0x10d   :  { %v184_v53 = vrot.slane %v174_v1, 7  ;;  %v194_v3 = vrot.slane %v174_v1, 1  ;;  %v183_v4 = vrot.slane %v173_v2, 7  ;;  %v193_v5 = vrot.slane %v173_v2, 1  ;;  %636 = vmatprep.mubr.msk.f32.mxu1 %vm219_vm4, %v173_v2 }
 0x10e   :  { %730 = vmatpush3.bf16.msra.mxu0 %v727_v55  ;;  %637 = vmatmul.mubr.msk.f32.gmra.mrb[2].mxu1 %vm219_vm4, %v174_v1 }
 0x10f   :  { %743 = vmatpush3.bf16.msra.mxu1 %v731_v58  ;;  %v189_v9 = vsel %vm179_vm5, 0.0, %v183_v4  ;;  %732 = vmatprep.subr.bf16.mxu0 %v731_v58  ;;  %v195_v11 = vsel %vm101_vm0, %v193_v5, %v194_v3  ;;  %v185_v12 = vsel %vm179_vm5, %v183_v4, %v184_v53  ;;  %v199_v13 = vsel %vm101_vm0, %v194_v3, 0.0 }
 0x110   :  { %660 = vmatprep.mubr.msk.f32.mxu0 %vm219_vm4, %v189_v9  ;;  %684 = vmatprep.mubr.msk.f32.mxu1 %vm219_vm4, %v195_v11 }
 0x111   :  { %661 = vmatmul.mubr.msk.f32.gmra.mrb[2].mxu0 %vm219_vm4, %v185_v12  ;;  %739 = vmatprep.subr.mxu1 %v570_v8 }
 0x112   :  { %734 = vmatpush3.bf16.msra.mxu0 %v731_v58  ;;  %681 = vmatprep.mubr.msk.f32.mxu0 %vm219_vm4, %v192_v7 }
 0x113   :  { %744 = vmatpush3.msra.mxu1 %v570_v8  ;;  %679 = vmatprep.subr.mxu0 %v570_v8 }
 0x114   :  { %685 = vmatmul.mubr.msk.f32.vlgmr.msra.gmra.mrb[4].mxu1 %vm219_vm4, %v199_v13 }
 0x116   :  { %680 = vmatpush3.msra.mxu0 %v570_v8 }
 0x117   :  { %682 = vmatmul.mubr.msk.f32.vlgmr.msra.gmra.mrb[0].mxu0 %vm219_vm4, %v198_v14 }
 0x1d5   :  { %v635_v15 = vpop.f32.mrb[0].mxu1 }
 0x1d6   :  { %v294_v16 = vpop.f32.mrb[1].mxu1 }
 0x1e1   :  { %v638_v17 = vpop.f32.mrb[2].mxu1 }
 0x1e2   :  { %v304_v18 = vpop.f32.mrb[3].mxu1 }
 0x1e4   :  { %v662_v19 = vpop.f32.mrb[2].mxu0 }
 0x1e5   :  { %v405_v20 = vadd.f32 %v662_v19, %v638_v17  ;;  %v399_v21 = vpop.f32.mrb[3].mxu0 }
 0x1e6   :  { %v400_v22 = vadd.f32 %v399_v21, %v304_v18 }
 0x1e7   :  { %v686_v23 = vpop.f32.mrb[4].mxu1 }
 0x1e8   :  { %v516_v24 = vadd.f32 %v686_v23, %v405_v20  ;;  %v504_v25 = vpop.f32.mrb[5].mxu1 }
 0x1e9   :  { %v515_v27 = vadd.f32 %v504_v25, %v400_v22 }
 0x1ea   :  { %v527_v28 = vadd.f32 %v575_v10, %v516_v24  ;;  %v683_v30 = vpop.f32.mrb[0].mxu0 }
 0x1eb   :  { %v526_v6 = vadd.f32 %v575_v10, %v515_v27  ;;  %v745_v31 = vadd.f32 %v683_v30, %v635_v15  ;;  %v494_v32 = vpop.f32.mrb[1].mxu0 }
 0x1ec   :  { %v535_v33 = vadd.f32 %v531_v26, %v527_v28  ;;  %v746_v35 = vadd.f32 %v494_v32, %v294_v16 }
 0x1ed   :  { %v534_v36 = vadd.f32 %v530_v29, %v526_v6  ;;  %v525_v37 = vadd.f32 %v745_v31, %v575_v10 }
 0x1ee   :  { %540 = vst.msk [vmem:[%s990_s4 + $0x18] sm:$0xff] %vm536_vm6, %v535_v33  ;;  %v524_v39 = vadd.f32 %v746_v35, %v575_v10 }
 0x1ef   :  { %539 = vst.msk [vmem:[%s990_s4 + $0x10] sm:$0xff] %vm536_vm6, %v534_v36  ;;  %v533_v40 = vadd.f32 %v529_v34, %v525_v37 }
 0x1f0   :  { %v532_v41 = vadd.f32 %v528_v38, %v524_v39 }
 0x1f1   :  { %538 = vst.msk [vmem:[%s990_s4 + $0x8] sm:$0xff] %vm536_vm6, %v533_v40 }
 0x1f2   :  { %537 = vst.msk [vmem:[%s990_s4] sm:$0xff] %vm536_vm6, %v532_v41 }

</bundles_post_ra>
